<compile_context>
chip_gen: v6e
topology: v6e:2x2x1
jax: 0.10.0
libtpu: 0.0.40
codegen_flags: <defaults>
</compile_context>

<pallas_src>
import jax
import jax.numpy as jnp
from jax.experimental import pallas as pl
from jax.experimental.pallas import tpu as pltpu


def _round_up(n, m):
    return ((n + m - 1) // m) * m


def _gaussian_train_kernel(x_ref, w_ref, b_ref, eps_ref, out_ref):
    # Fused matmul for both heads on the MXU (f32 accumulate): h = [mu | log_var].
    h = jnp.dot(x_ref[...], w_ref[...],
                preferred_element_type=jnp.float32) + b_ref[...]
    z_dim = eps_ref.shape[-1]
    mu = h[:, :z_dim]
    log_var = h[:, z_dim:]

    # Reparameterisation trick: z = mu + exp(0.5 * log_var) * eps
    z = mu + jnp.exp(0.5 * log_var) * eps_ref[...]

    # Packed lane-contiguous output [mu | log_var | z]; direct sub-stores
    # (no concatenate temp).
    out_ref[:, : 2 * z_dim] = h
    out_ref[:, 2 * z_dim:] = z


def _gaussian_eval_kernel(x_ref, w_ref, b_ref, out_ref):
    # Inference: only mu / log_var needed (z == mu); no RNG, no exp.
    out_ref[...] = jnp.dot(x_ref[...], w_ref[...],
                           preferred_element_type=jnp.float32) + b_ref[...]


def fuse_gaussian_params(w_mu, b_mu, w_lv, b_lv):
    """Fuse the two nn.Linear heads once, at parameter level.

    w_mu / w_lv: [H, Z] (pre-transposed vs. torch), b_*: [1, Z].
    Returns (w_cat [H, 2Z], b_cat [1, 2Z]) in f32.
    """
    w_cat = jnp.concatenate([w_mu, w_lv], axis=1).astype(jnp.float32)
    b_cat = jnp.concatenate([b_mu, b_lv], axis=1).astype(jnp.float32)
    return w_cat, b_cat


def gaussian_sample(x, w_cat, b_cat, *, eps=None, training=True, block_b=1024):
    """Pallas forward of Gaussian_sample.  Returns (z, mu, log_var), each [B, Z] f32.

    x: [B, H] f32; w_cat: [H, 2Z]; b_cat: [1, 2Z] (from fuse_gaussian_params).
    eps: [B, Z] standard-normal noise (required when training=True).
    """
    B, H = x.shape
    Z = w_cat.shape[1] // 2
    x = x.astype(jnp.float32)

    # One large batch tile (grid=(1,) for small/medium B).  For very large B
    # the batch axis is tiled at block_b rows on a "parallel" grid axis
    # (shards across the two TensorCores of a v7x chip).  No wrapper padding:
    # Pallas drops OOB writes of the ragged last block.
    tb = min(block_b, _round_up(B, 8))
    grid = (pl.cdiv(B, tb),)
    cparams = pltpu.CompilerParams(dimension_semantics=("parallel",))

    if training:
        if eps is None:
            raise ValueError("training=True requires eps of shape (B, Z)")
        eps = eps.astype(jnp.float32)
        out = pl.pallas_call(
            _gaussian_train_kernel,
            out_shape=jax.ShapeDtypeStruct((B, 3 * Z), jnp.float32),
            grid=grid,
            in_specs=[
                pl.BlockSpec((tb, H), lambda i: (i, 0)),        # x tile
                pl.BlockSpec((H, 2 * Z), lambda i: (0, 0)),     # fused W
                pl.BlockSpec((1, 2 * Z), lambda i: (0, 0)),     # fused b
                pl.BlockSpec((tb, Z), lambda i: (i, 0)),        # eps tile
            ],
            out_specs=pl.BlockSpec((tb, 3 * Z), lambda i: (i, 0)),
            compiler_params=cparams,
        )(x, w_cat, b_cat, eps)
        mu = out[:, 0:Z]
        log_var = out[:, Z:2 * Z]
        z = out[:, 2 * Z:3 * Z]
        return z, mu, log_var

    # Eval path: z == mu (as in the PyTorch module when self.training is False).
    out = pl.pallas_call(
        _gaussian_eval_kernel,
        out_shape=jax.ShapeDtypeStruct((B, 2 * Z), jnp.float32),
        grid=grid,
        in_specs=[
            pl.BlockSpec((tb, H), lambda i: (i, 0)),
            pl.BlockSpec((H, 2 * Z), lambda i: (0, 0)),
            pl.BlockSpec((1, 2 * Z), lambda i: (0, 0)),
        ],
        out_specs=pl.BlockSpec((tb, 2 * Z), lambda i: (i, 0)),
        compiler_params=cparams,
    )(x, w_cat, b_cat)
    mu = out[:, 0:Z]
    log_var = out[:, Z:2 * Z]
    return mu, mu, log_var


if __name__ == "__main__":
    # Small shapes consistent with the module: h_dim=32, z_dim=16, batch=200.
    B, H, Z = 200, 32, 16

    key = jax.random.PRNGKey(0)
    kx, kwm, kbm, kwl, kbl, keps = jax.random.split(key, 6)

    # nn.Linear default init U(-1/sqrt(h_dim), 1/sqrt(h_dim)); weights stored
    # pre-transposed as [H, Z].
    bound = 1.0 / jnp.sqrt(jnp.float32(H))
    w_mu = jax.random.uniform(kwm, (H, Z), jnp.float32, -bound, bound)
    b_mu = jax.random.uniform(kbm, (1, Z), jnp.float32, -bound, bound)
    w_lv = jax.random.uniform(kwl, (H, Z), jnp.float32, -bound, bound)
    b_lv = jax.random.uniform(kbl, (1, Z), jnp.float32, -bound, bound)
    x = jax.random.normal(kx, (B, H), jnp.float32)
    eps = jax.random.normal(keps, (B, Z), jnp.float32)   # torch.randn(mu.size())

    # Fuse parameters ONCE (outside the forward call).
    w_cat, b_cat = fuse_gaussian_params(w_mu, b_mu, w_lv, b_lv)

    # --- training mode ---
    z, mu, log_var = gaussian_sample(x, w_cat, b_cat, eps=eps, training=True)
    jax.block_until_ready((z, mu, log_var))
    assert z.shape == (B, Z) and mu.shape == (B, Z) and log_var.shape == (B, Z)

    # Pure-JAX reference.
    mu_ref = x @ w_mu + b_mu
    lv_ref = x @ w_lv + b_lv
    z_ref = mu_ref + jnp.exp(0.5 * lv_ref) * eps
    assert jnp.allclose(mu, mu_ref, atol=2e-3, rtol=2e-3)
    assert jnp.allclose(log_var, lv_ref, atol=2e-3, rtol=2e-3)
    assert jnp.allclose(z, z_ref, atol=2e-3, rtol=2e-3)
    assert bool(jnp.all(jnp.isfinite(z)))

    # --- eval mode: z == mu, no sampling ---
    z_e, mu_e, lv_e = gaussian_sample(x, w_cat, b_cat, training=False)
    jax.block_until_ready((z_e, mu_e, lv_e))
    assert jnp.allclose(z_e, mu_e)
    assert jnp.allclose(mu_e, mu_ref, atol=2e-3, rtol=2e-3)
    assert jnp.allclose(lv_e, lv_ref, atol=2e-3, rtol=2e-3)

    print("KERNEL_OK")
</pallas_src>

<mosaic_0001>
module attributes {stable_mosaic.version = 11 : i64} {
  func.func @_gaussian_train_kernel(%arg0: i32, %arg1: memref<200x32xf32, #tpu.memory_space<vmem>>, %arg2: memref<32x32xf32, #tpu.memory_space<vmem>>, %arg3: memref<1x32xf32, #tpu.memory_space<vmem>>, %arg4: memref<200x16xf32, #tpu.memory_space<vmem>>, %arg5: memref<200x48xf32, #tpu.memory_space<vmem>>) attributes {dimension_semantics = [#tpu.dimension_semantics<parallel>], iteration_bounds = array<i64: 1>, scalar_prefetch = 0 : i64, scratch_operands = 0 : i64, tpu.core_type = #tpu.core_type<tc>, window_params = [{transform_indices = @transform_0, window_bounds = array<i64: 200, 32>}, {pipeline_mode = #tpu.pipeline_mode<synchronous>, transform_indices = @transform_1, window_bounds = array<i64: 32, 32>}, {pipeline_mode = #tpu.pipeline_mode<synchronous>, transform_indices = @transform_2, window_bounds = array<i64: 1, 32>}, {transform_indices = @transform_3, window_bounds = array<i64: 200, 16>}, {transform_indices = @transform_4, window_bounds = array<i64: 200, 48>}]} {
    %c0 = arith.constant 0 : index
    %c0_0 = arith.constant 0 : index
    %0 = vector.load %arg1[%c0, %c0_0] : memref<200x32xf32, #tpu.memory_space<vmem>>, vector<200x32xf32>
    %c0_1 = arith.constant 0 : index
    %c0_2 = arith.constant 0 : index
    %1 = vector.load %arg2[%c0_1, %c0_2] : memref<32x32xf32, #tpu.memory_space<vmem>>, vector<32x32xf32>
    %cst = arith.constant dense<0.000000e+00> : vector<200x32xf32>
    %2 = tpu.matmul %0, %1, %cst {dimension_numbers = #tpu.dot_dimension_numbers<[1], [0], [0], [1], [0, 0, 1, 1], [], []>} : vector<200x32xf32>, vector<32x32xf32>, vector<200x32xf32> -> vector<200x32xf32>
    %c0_3 = arith.constant 0 : index
    %c0_4 = arith.constant 0 : index
    %3 = vector.load %arg3[%c0_3, %c0_4] : memref<1x32xf32, #tpu.memory_space<vmem>>, vector<1x32xf32>
    %4 = vector.broadcast %3 : vector<1x32xf32> to vector<200x32xf32>
    %5 = arith.addf %2, %4 : vector<200x32xf32>
    %6 = vector.extract_strided_slice %5 {offsets = [0, 0], sizes = [200, 16], strides = [1, 1]} : vector<200x32xf32> to vector<200x16xf32>
    %7 = vector.extract_strided_slice %5 {offsets = [0, 16], sizes = [200, 16], strides = [1, 1]} : vector<200x32xf32> to vector<200x16xf32>
    %cst_5 = arith.constant 5.000000e-01 : f32
    %8 = vector.broadcast %cst_5 : f32 to vector<200x16xf32>
    %9 = arith.mulf %8, %7 : vector<200x16xf32>
    %10 = math.exp %9 : vector<200x16xf32>
    %c0_6 = arith.constant 0 : index
    %c0_7 = arith.constant 0 : index
    %11 = vector.load %arg4[%c0_6, %c0_7] : memref<200x16xf32, #tpu.memory_space<vmem>>, vector<200x16xf32>
    %12 = arith.mulf %10, %11 : vector<200x16xf32>
    %13 = arith.addf %6, %12 : vector<200x16xf32>
    %c0_8 = arith.constant 0 : index
    %c0_9 = arith.constant 0 : index
    %14 = vector.load %arg5[%c0_8, %c0_9] : memref<200x48xf32, #tpu.memory_space<vmem>>, vector<200x32xf32>
    tpu.vector_store %arg5[%c0_8, %c0_9], %5 {strides = array<i32>} : memref<200x48xf32, #tpu.memory_space<vmem>>, vector<200x32xf32>,
    %c0_10 = arith.constant 0 : index
    %c32 = arith.constant 32 : index
    %15 = vector.load %arg5[%c0_10, %c32] : memref<200x48xf32, #tpu.memory_space<vmem>>, vector<200x16xf32>
    tpu.vector_store %arg5[%c0_10, %c32], %13 {strides = array<i32>} : memref<200x48xf32, #tpu.memory_space<vmem>>, vector<200x16xf32>,
    return
  }
  func.func @transform_0(%arg0: i32) -> (i32, i32) {
    %c0_i32 = arith.constant 0 : i32
    %c0_i32_0 = arith.constant 0 : i32
    return %arg0, %c0_i32 : i32, i32
  }
  func.func @transform_1(%arg0: i32) -> (i32, i32) {
    %c0_i32 = arith.constant 0 : i32
    %c0_i32_0 = arith.constant 0 : i32
    %c0_i32_1 = arith.constant 0 : i32
    return %c0_i32, %c0_i32_0 : i32, i32
  }
  func.func @transform_2(%arg0: i32) -> (i32, i32) {
    %c0_i32 = arith.constant 0 : i32
    %c0_i32_0 = arith.constant 0 : i32
    %c0_i32_1 = arith.constant 0 : i32
    return %c0_i32, %c0_i32_0 : i32, i32
  }
  func.func @transform_3(%arg0: i32) -> (i32, i32) {
    %c0_i32 = arith.constant 0 : i32
    %c0_i32_0 = arith.constant 0 : i32
    return %arg0, %c0_i32 : i32, i32
  }
  func.func @transform_4(%arg0: i32) -> (i32, i32) {
    %c0_i32 = arith.constant 0 : i32
    %c0_i32_0 = arith.constant 0 : i32
    return %arg0, %c0_i32 : i32, i32
  }
}

</mosaic_0001>

<bundles_post_ra>
// kernel: tpu_custom_call.1
= control target key start
LH: loop header
LB: loop body
LE: loop exit
PB: predicated region body
PF: predicated region fallthrough
CT: control target
= control target key end

     0   :  { %v1025_v0 = vmov 0.0   ;;  %vm53_vm0 = vcmask 261120   ;;  %vm1026_vm1 = vmmov 0   ;;  %s1027_s8 = smov 16   ;;  %s1028_s15 = smov 112   ;;  %vm794_vm2 = vcmask 392448   ;;  %s1769_s1 = inlined_call_operand.vmem [shape: f32[32,32], index: 1, kind: input, shape index: {}]   ;;  %s1770_s0 = inlined_call_operand.vmem [shape: f32[200,32], index: 0, kind: input, shape index: {}]   ;;  %s1771_s3 = inlined_call_operand.vmem [shape: f32[200,16], index: 3, kind: input, shape index: {}]   ;;  %s1772_s2 = inlined_call_operand.vmem [shape: f32[1,32], index: 2, kind: input, shape index: {}]   ;;  %s1773_s4 = inlined_call_operand.vmem [shape: f32[200,48], index: 4, kind: output, shape index: {}]  }
   0x1   :  { %879 = vmatprep.subr.mxu0 %v1025_v0  ;;  %962 = vmatprep.subr.mxu1 %v1025_v0  ;;  %v45_v1 = vld [vmem:[%s1769_s1 + $0x18] sm:$0xff]  ;;  %v44_v2 = vld [vmem:[%s1769_s1 + $0x10] sm:$0xff]  ;;  %v43_v3 = vld [vmem:[%s1769_s1 + $0x8] sm:$0xff]  ;;  %s1029_s12 = smov 32  }
   0x2   :  { %880 = vmatpush3.msra.mxu0 %v45_v1  ;;  %966 = vmatpush3.msra.mxu1 %v45_v1  ;;  %v42_v4 = vld [vmem:[%s1769_s1] sm:$0xff]  ;;  %v30_v6 = vld [vmem:[%s1770_s0 + $0x68] sm:$0xff]  ;;  %v396_v7 = vld [vmem:[%s1771_s3 + $0x10] sm:$0xff] }
   0x3   :  { %881 = vmatprep.subr.mxu0 %v1025_v0  ;;  %963 = vmatprep.subr.mxu1 %v1025_v0  ;;  %v17_v5 = vld [vmem:[%s1770_s0] sm:$0xff]  ;;  %v18_v8 = vld [vmem:[%s1770_s0 + $0x8] sm:$0xff]  ;;  %v31_v9 = vld [vmem:[%s1770_s0 + $0x70] sm:$0xff] }
   0x4   :  { %882 = vmatpush3.msra.mxu0 %v44_v2  ;;  %967 = vmatpush3.msra.mxu1 %v44_v2  ;;  %v394_v10 = vld [vmem:[%s1771_s3] sm:$0xff]  ;;  %v397_v11 = vld [vmem:[%s1771_s3 + $0x18] sm:$0xff]  ;;  %v395_v12 = vld [vmem:[%s1771_s3 + $0x8] sm:$0xff] }
   0x5   :  { %883 = vmatprep.subr.mxu0 %v1025_v0  ;;  %964 = vmatprep.subr.mxu1 %v1025_v0  ;;  %v19_v13 = vld [vmem:[%s1770_s0 + $0x10] sm:$0xff]  ;;  %v32_v14 = vld [vmem:[%s1770_s0 + $0x78] sm:$0xff]  ;;  %v399_v15 = vld [vmem:[%s1771_s3 + $0x28] sm:$0xff] }
   0x6   :  { %884 = vmatpush3.msra.mxu0 %v43_v3  ;;  %968 = vmatpush3.msra.mxu1 %v43_v3  ;;  %v398_v16 = vld [vmem:[%s1771_s3 + $0x20] sm:$0xff]  ;;  %v20_v17 = vld [vmem:[%s1770_s0 + $0x18] sm:$0xff]  ;;  %v400_v20 = vld [vmem:[%s1771_s3 + $0x30] sm:$0xff] }
   0x7   :  { %885 = vmatprep.subr.mxu0 %v1025_v0  ;;  %965 = vmatprep.subr.mxu1 %v1025_v0  ;;  %v33_v18 = vld [vmem:[%s1770_s0 + $0x80] sm:$0xff]  ;;  %v401_v19 = vld [vmem:[%s1771_s3 + $0x38] sm:$0xff]  ;;  %v34_v22 = vld [vmem:[%s1770_s0 + $0x88] sm:$0xff] }
   0x8   :  { %886 = vmatpush3.msra.mxu0 %v42_v4  ;;  %969 = vmatpush3.msra.mxu1 %v42_v4  ;;  %v21_v21 = vld [vmem:[%s1770_s0 + $0x20] sm:$0xff]  ;;  %v403_v23 = vld [vmem:[%s1771_s3 + $0x48] sm:$0xff]  ;;  %v35_v26 = vld [vmem:[%s1770_s0 + $0x90] sm:$0xff] }
   0x9   :  { %887 = vmatprep.mubr.msk.f32.mxu0 %vm1026_vm1, %v1025_v0  ;;  %926 = vmatprep.mubr.msk.f32.mxu1 %vm1026_vm1, %v1025_v0  ;;  %v402_v24 = vld [vmem:[%s1771_s3 + $0x40] sm:$0xff]  ;;  %v22_v25 = vld [vmem:[%s1770_s0 + $0x28] sm:$0xff]  ;;  %v405_v27 = vld [vmem:[%s1771_s3 + $0x58] sm:$0xff] }
   0xa   :  { %888 = vmatmul.mubr.msk.f32.vlgmr.msra.gmra.mxu0 %vm53_vm0, %v17_v5  ;;  %927 = vmatmul.mubr.msk.f32.vlgmr.msra.gmra.mxu1 %vm53_vm0, %v30_v6  ;;  %v404_v28 = vld [vmem:[%s1771_s3 + $0x50] sm:$0xff]  ;;  %v36_v30 = vld [vmem:[%s1770_s0 + $0x98] sm:$0xff]  ;;  %v407_v31 = vld [vmem:[%s1771_s3 + $0x68] sm:$0xff] }
   0xb   :  { %890 = vmatprep.mubr.msk.f32.mxu0 %vm1026_vm1, %v1025_v0  ;;  %929 = vmatprep.mubr.msk.f32.mxu1 %vm1026_vm1, %v1025_v0  ;;  %v23_v29 = vld [vmem:[%s1770_s0 + $0x30] sm:$0xff]  ;;  %v406_v32 = vld [vmem:[%s1771_s3 + $0x60] sm:$0xff]  ;;  %v24_v33 = vld [vmem:[%s1770_s0 + $0x38] sm:$0xff] }
   0xc   :  { %448 = vrot.lane.b32.xlu1 %v396_v7, %s1027_s8  ;;  %444 = vrot.lane.b32.xlu0 %v394_v10, %s1027_s8  ;;  %v37_v34 = vld [vmem:[%s1770_s0 + $0xa0] sm:$0xff]  ;;  %v408_v35 = vld [vmem:[%s1771_s3 + $0x70] sm:$0xff] }
   0xd   :  { %v409_v36 = vld [vmem:[%s1771_s3 + $0x78] sm:$0xff]  ;;  %v25_v37 = vld [vmem:[%s1770_s0 + $0x40] sm:$0xff]  ;;  %v38_v38 = vld [vmem:[%s1770_s0 + $0xa8] sm:$0xff] }
   0xe   :  { %891 = vmatmul.mubr.msk.f32.gmra.mxu0 %vm53_vm0, %v18_v8  ;;  %930 = vmatmul.mubr.msk.f32.gmra.mxu1 %vm53_vm0, %v31_v9  ;;  %v410_v39 = vld [vmem:[%s1771_s3 + $0x80] sm:$0xff]  ;;  %v411_v40 = vld [vmem:[%s1771_s3 + $0x88] sm:$0xff]  ;;  %v39_v42 = vld [vmem:[%s1770_s0 + $0xb0] sm:$0xff] }
   0xf   :  { %893 = vmatprep.mubr.msk.f32.mxu0 %vm1026_vm1, %v1025_v0  ;;  %932 = vmatprep.mubr.msk.f32.mxu1 %vm1026_vm1, %v1025_v0  ;;  %v26_v41 = vld [vmem:[%s1770_s0 + $0x48] sm:$0xff]  ;;  %v412_v43 = vld [vmem:[%s1771_s3 + $0x90] sm:$0xff]  ;;  %v413_v44 = vld [vmem:[%s1771_s3 + $0x98] sm:$0xff] }
  0x10   :  { %450 = vrot.lane.b32.xlu1 %v397_v11, %s1027_s8  ;;  %446 = vrot.lane.b32.xlu0 %v395_v12, %s1027_s8  ;;  %v27_v45 = vld [vmem:[%s1770_s0 + $0x50] sm:$0xff]  ;;  %v40_v46 = vld [vmem:[%s1770_s0 + $0xb8] sm:$0xff] }
  0x11   :  { %v414_v47 = vld [vmem:[%s1771_s3 + $0xa0] sm:$0xff]  ;;  %v415_v48 = vld [vmem:[%s1771_s3 + $0xa8] sm:$0xff]  ;;  %v28_v49 = vld [vmem:[%s1770_s0 + $0x58] sm:$0xff] }
  0x12   :  { %894 = vmatmul.mubr.msk.f32.gmra.mxu0 %vm53_vm0, %v19_v13  ;;  %933 = vmatmul.mubr.msk.f32.gmra.mxu1 %vm53_vm0, %v32_v14  ;;  %v41_v50 = vld [vmem:[%s1770_s0 + $0xc0] sm:$0xff]  ;;  %v416_v51 = vld [vmem:[%s1771_s3 + $0xb0] sm:$0xff]  ;;  %v417_v52 = vld [vmem:[%s1771_s3 + $0xb8] sm:$0xff] }
  0x13   :  { %896 = vmatprep.mubr.msk.f32.mxu0 %vm1026_vm1, %v1025_v0  ;;  %935 = vmatprep.mubr.msk.f32.mxu1 %vm1026_vm1, %v1025_v0  ;;  %v29_v53 = vld [vmem:[%s1770_s0 + $0x60] sm:$0xff] }
  0x14   :  { %454 = vrot.lane.b32.xlu1 %v399_v15, %s1027_s8  ;;  %452 = vrot.lane.b32.xlu0 %v398_v16, %s1027_s8  ;;  %v418_v54 = vld [vmem:[%s1771_s3 + $0xc0] sm:$0xff] }
  0x15   :  { %v1340_v61 = vld [vmem:[%s1772_s2] ss:$0 sm:$0xff] }
  0x16   :  { %897 = vmatmul.mubr.msk.f32.gmra.mxu0 %vm53_vm0, %v20_v17  ;;  %936 = vmatmul.mubr.msk.f32.gmra.mxu1 %vm53_vm0, %v33_v18 }
  0x17   :  { %899 = vmatprep.mubr.msk.f32.mxu0 %vm1026_vm1, %v1025_v0  ;;  %938 = vmatprep.mubr.msk.f32.mxu1 %vm1026_vm1, %v1025_v0 }
  0x18   :  { %458 = vrot.lane.b32.xlu1 %v401_v19, %s1027_s8  ;;  %456 = vrot.lane.b32.xlu0 %v400_v20, %s1027_s8 }
  0x1a   :  { %900 = vmatmul.mubr.msk.f32.gmra.mxu0 %vm53_vm0, %v21_v21  ;;  %939 = vmatmul.mubr.msk.f32.gmra.mxu1 %vm53_vm0, %v34_v22 }
  0x1b   :  { %902 = vmatprep.mubr.msk.f32.mxu0 %vm1026_vm1, %v1025_v0  ;;  %941 = vmatprep.mubr.msk.f32.mxu1 %vm1026_vm1, %v1025_v0 }
  0x1c   :  { %462 = vrot.lane.b32.xlu1 %v403_v23, %s1027_s8  ;;  %460 = vrot.lane.b32.xlu0 %v402_v24, %s1027_s8 }
  0x1e   :  { %903 = vmatmul.mubr.msk.f32.gmra.mxu0 %vm53_vm0, %v22_v25  ;;  %942 = vmatmul.mubr.msk.f32.gmra.mxu1 %vm53_vm0, %v35_v26 }
  0x1f   :  { %905 = vmatprep.mubr.msk.f32.mxu0 %vm1026_vm1, %v1025_v0  ;;  %944 = vmatprep.mubr.msk.f32.mxu1 %vm1026_vm1, %v1025_v0 }
  0x20   :  { %466 = vrot.lane.b32.xlu1 %v405_v27, %s1027_s8  ;;  %464 = vrot.lane.b32.xlu0 %v404_v28, %s1027_s8 }
  0x22   :  { %906 = vmatmul.mubr.msk.f32.gmra.mxu0 %vm53_vm0, %v23_v29  ;;  %945 = vmatmul.mubr.msk.f32.gmra.mxu1 %vm53_vm0, %v36_v30 }
  0x23   :  { %908 = vmatprep.mubr.msk.f32.mxu0 %vm1026_vm1, %v1025_v0  ;;  %947 = vmatprep.mubr.msk.f32.mxu1 %vm1026_vm1, %v1025_v0 }
  0x24   :  { %470 = vrot.lane.b32.xlu1 %v407_v31, %s1027_s8  ;;  %468 = vrot.lane.b32.xlu0 %v406_v32, %s1027_s8 }
  0x26   :  { %909 = vmatmul.mubr.msk.f32.gmra.mxu0 %vm53_vm0, %v24_v33  ;;  %948 = vmatmul.mubr.msk.f32.gmra.mxu1 %vm53_vm0, %v37_v34 }
  0x27   :  { %911 = vmatprep.mubr.msk.f32.mxu0 %vm1026_vm1, %v1025_v0  ;;  %950 = vmatprep.mubr.msk.f32.mxu1 %vm1026_vm1, %v1025_v0 }
  0x28   :  { %472 = vrot.lane.b32.xlu0 %v408_v35, %s1027_s8  ;;  %474 = vrot.lane.b32.xlu1 %v409_v36, %s1027_s8 }
  0x2a   :  { %912 = vmatmul.mubr.msk.f32.gmra.mxu0 %vm53_vm0, %v25_v37  ;;  %951 = vmatmul.mubr.msk.f32.gmra.mxu1 %vm53_vm0, %v38_v38 }
  0x2b   :  { %914 = vmatprep.mubr.msk.f32.mxu0 %vm1026_vm1, %v1025_v0  ;;  %953 = vmatprep.mubr.msk.f32.mxu1 %vm1026_vm1, %v1025_v0 }
  0x2c   :  { %476 = vrot.lane.b32.xlu0 %v410_v39, %s1027_s8  ;;  %478 = vrot.lane.b32.xlu1 %v411_v40, %s1027_s8 }
  0x2e   :  { %915 = vmatmul.mubr.msk.f32.gmra.mxu0 %vm53_vm0, %v26_v41  ;;  %954 = vmatmul.mubr.msk.f32.gmra.mxu1 %vm53_vm0, %v39_v42 }
  0x2f   :  { %917 = vmatprep.mubr.msk.f32.mxu0 %vm1026_vm1, %v1025_v0  ;;  %956 = vmatprep.mubr.msk.f32.mxu1 %vm1026_vm1, %v1025_v0 }
  0x30   :  { %480 = vrot.lane.b32.xlu0 %v412_v43, %s1027_s8  ;;  %482 = vrot.lane.b32.xlu1 %v413_v44, %s1027_s8 }
  0x32   :  { %918 = vmatmul.mubr.msk.f32.gmra.mxu0 %vm53_vm0, %v27_v45  ;;  %957 = vmatmul.mubr.msk.f32.gmra.mxu1 %vm53_vm0, %v40_v46 }
  0x33   :  { %920 = vmatprep.mubr.msk.f32.mxu0 %vm1026_vm1, %v1025_v0  ;;  %959 = vmatprep.mubr.msk.f32.mxu1 %vm1026_vm1, %v1025_v0 }
  0x34   :  { %484 = vrot.lane.b32.xlu0 %v414_v47, %s1027_s8  ;;  %486 = vrot.lane.b32.xlu1 %v415_v48, %s1027_s8 }
  0x36   :  { %921 = vmatmul.mubr.msk.f32.gmra.mxu0 %vm53_vm0, %v28_v49  ;;  %960 = vmatmul.mubr.msk.f32.gmra.mxu1 %vm53_vm0, %v41_v50 }
  0x37   :  { %923 = vmatprep.mubr.msk.f32.mxu0 %vm1026_vm1, %v1025_v0 }
  0x38   :  { %488 = vrot.lane.b32.xlu0 %v416_v51, %s1027_s8  ;;  %490 = vrot.lane.b32.xlu1 %v417_v52, %s1027_s8 }
  0x3a   :  { %924 = vmatmul.mubr.msk.f32.gmra.mxu0 %vm53_vm0, %v29_v53 }
  0x3c   :  { %492 = vrot.lane.b32.xlu0 %v418_v54, %s1027_s8 }
  0x7e   :  { %v1325_v55 = vpop.permute.xlu0 %444  ;;  %v1327_v56 = vpop.permute.xlu1 %448 }
  0x82   :  { %v1329_v57 = vpop.permute.xlu0 %446  ;;  %v1331_v58 = vpop.permute.xlu1 %450 }
  0x86   :  { %v1333_v59 = vpop.permute.xlu0 %452  ;;  %v1335_v60 = vpop.permute.xlu1 %454 }
  0x8a   :  { %v1342_v62 = vpop.permute.xlu0 %456  ;;  %v1350_v3 = vpop.permute.xlu1 %458 }
  0x8e   :  { %v1370_v14 = vpop.permute.xlu0 %460  ;;  %v1384_v19 = vpop.permute.xlu1 %462 }
  0x92   :  { %v1404_v30 = vpop.permute.xlu0 %464  ;;  %v1412_v37 = vpop.permute.xlu1 %466 }
  0x96   :  { %v1432_v48 = vpop.permute.xlu0 %468  ;;  %v471_v53 = vpop.permute.xlu1 %470 }
  0xca   :  { %v195_v63 = vpop.f32.mrf.mxu0  ;;  %v260_v0 = vpop.f32.mrf.mxu1 }
  0xcb   :  { %v1345_v1 = vadd.f32 %v1340_v61, %v195_v63  ;;  %v1348_v2 = vadd.f32 %v1340_v61, %v260_v0 }
  0xcc   :  { %v889_v4 = vpop.f32.mrf.mxu0  ;;  %v928_v5 = vpop.f32.mrf.mxu1 }
  0xcd   :  { %v319_v6 = vmul.f32 0.5, %v1345_v1  ;;  %669 = vst.msk [vmem:[%s1773_s4] sm:$0xff] %vm53_vm0, %v1345_v1  ;;  %v332_v7 = vmul.f32 0.5, %v1348_v2  ;;  %682 = vst.msk [vmem:[%s1773_s4 + $0x68] sm:$0xff] %vm53_vm0, %v1348_v2 }
  0xce   :  { %v200_v8 = vpop.f32.mrf.mxu0  ;;  %v265_v9 = vpop.f32.mrf.mxu1 }
  0xcf   :  { %v344_v10 = vmul.f32 1.442695, %v319_v6  ;;  %v370_v11 = vmul.f32 1.442695, %v332_v7  ;;  %v1365_v12 = vadd.f32 %v1340_v61, %v200_v8  ;;  %v1368_v13 = vadd.f32 %v1340_v61, %v265_v9 }
  0xd0   :  { %v892_v15 = vpop.f32.mrf.mxu0  ;;  %v931_v16 = vpop.f32.mrf.mxu1 }
  0xd1   :  { %975 = vpow2.f32 %v344_v10  ;;  %v320_v17 = vmul.f32 0.5, %v1365_v12  ;;  %670 = vst.msk [vmem:[%s1773_s4 + $0x8] sm:$0xff] %vm53_vm0, %v1365_v12  ;;  %v333_v18 = vmul.f32 0.5, %v1368_v13  ;;  %683 = vst.msk [vmem:[%s1773_s4 + $0x70] sm:$0xff] %vm53_vm0, %v1368_v13 }
  0xd2   :  { %977 = vpow2.f32 %v370_v11  ;;  %v205_v20 = vpop.f32.mrf.mxu0  ;;  %v270_v21 = vpop.f32.mrf.mxu1 }
  0xd3   :  { %v346_v22 = vmul.f32 1.442695, %v320_v17  ;;  %v372_v23 = vmul.f32 1.442695, %v333_v18  ;;  %v1387_v24 = vadd.f32 %v1340_v61, %v205_v20  ;;  %v1390_v25 = vadd.f32 %v1340_v61, %v270_v21  ;;  %v473_v18 = vpop.permute.xlu0 %472 }
  0xd4   :  { %v895_v26 = vpop.f32.mrf.mxu0  ;;  %v934_v27 = vpop.f32.mrf.mxu1 }
  0xd5   :  { %979 = vpow2.f32 %v346_v22  ;;  %v321_v28 = vmul.f32 0.5, %v1387_v24  ;;  %671 = vst.msk [vmem:[%s1773_s4 + $0x10] sm:$0xff] %vm53_vm0, %v1387_v24  ;;  %v334_v29 = vmul.f32 0.5, %v1390_v25  ;;  %684 = vst.msk [vmem:[%s1773_s4 + $0x78] sm:$0xff] %vm53_vm0, %v1390_v25 }
  0xd6   :  { %981 = vpow2.f32 %v372_v23  ;;  %v210_v31 = vpop.f32.mrf.mxu0  ;;  %v275_v32 = vpop.f32.mrf.mxu1 }
  0xd7   :  { %v348_v33 = vmul.f32 1.442695, %v321_v28  ;;  %v374_v34 = vmul.f32 1.442695, %v334_v29  ;;  %v1407_v35 = vadd.f32 %v1340_v61, %v210_v31  ;;  %v1410_v36 = vadd.f32 %v1340_v61, %v275_v32 }
  0xd8   :  { %v898_v38 = vpop.f32.mrf.mxu0  ;;  %v937_v39 = vpop.f32.mrf.mxu1 }
  0xd9   :  { %983 = vpow2.f32 %v348_v33  ;;  %v322_v40 = vmul.f32 0.5, %v1407_v35  ;;  %672 = vst.msk [vmem:[%s1773_s4 + $0x18] sm:$0xff] %vm53_vm0, %v1407_v35  ;;  %v335_v41 = vmul.f32 0.5, %v1410_v36  ;;  %685 = vst.msk [vmem:[%s1773_s4 + $0x80] sm:$0xff] %vm53_vm0, %v1410_v36  ;;  %v475_v39 = vpop.permute.xlu1 %474 }
  0xda   :  { %985 = vpow2.f32 %v374_v34  ;;  %v215_v42 = vpop.f32.mrf.mxu0  ;;  %v280_v43 = vpop.f32.mrf.mxu1 }
  0xdb   :  { %v350_v44 = vmul.f32 1.442695, %v322_v40  ;;  %v376_v45 = vmul.f32 1.442695, %v335_v41  ;;  %v1427_v46 = vadd.f32 %v1340_v61, %v215_v42  ;;  %v1430_v47 = vadd.f32 %v1340_v61, %v280_v43 }
  0xdc   :  { %v901_v49 = vpop.f32.mrf.mxu0  ;;  %v940_v50 = vpop.f32.mrf.mxu1 }
  0xdd   :  { %987 = vpow2.f32 %v350_v44  ;;  %v323_v51 = vmul.f32 0.5, %v1427_v46  ;;  %673 = vst.msk [vmem:[%s1773_s4 + $0x20] sm:$0xff] %vm53_vm0, %v1427_v46  ;;  %v336_v52 = vmul.f32 0.5, %v1430_v47  ;;  %686 = vst.msk [vmem:[%s1773_s4 + $0x88] sm:$0xff] %vm53_vm0, %v1430_v47 }
  0xde   :  { %v976_v54 = vpop.eup %975  ;;  %989 = vpow2.f32 %v376_v45  ;;  %v220_v63 = vpop.f32.mrf.mxu0 }
  0xdf   :  { %v285_v0 = vpop.f32.mrf.mxu1  ;;  %v978_v4 = vpop.eup %977  ;;  %v352_v5 = vmul.f32 1.442695, %v323_v51  ;;  %v378_v6 = vmul.f32 1.442695, %v336_v52  ;;  %v1447_v7 = vadd.f32 %v1340_v61, %v220_v63  ;;  %v519_v15 = vmul.f32 %v976_v54, %v1325_v55 }
  0xe0   :  { %v1450_v8 = vadd.f32 %v1340_v61, %v285_v0  ;;  %v532_v9 = vmul.f32 %v978_v4, %v471_v53  ;;  %v904_v10 = vpop.f32.mrf.mxu0  ;;  %v477_v0 = vpop.permute.xlu0 %476 }
  0xe1   :  { %v943_v11 = vpop.f32.mrf.mxu1  ;;  %991 = vpow2.f32 %v352_v5  ;;  %v324_v16 = vmul.f32 0.5, %v1447_v7  ;;  %674 = vst.msk [vmem:[%s1773_s4 + $0x28] sm:$0xff] %vm53_vm0, %v1447_v7  ;;  %569 = vrot.lane.b32.xlu1 %v519_v15, %s1028_s15 }
  0xe2   :  { %v337_v17 = vmul.f32 0.5, %v1450_v8  ;;  %687 = vst.msk [vmem:[%s1773_s4 + $0x90] sm:$0xff] %vm53_vm0, %v1450_v8  ;;  %v980_v20 = vpop.eup %979  ;;  %993 = vpow2.f32 %v378_v6  ;;  %595 = vrot.lane.b32.xlu0 %v532_v9, %s1028_s15  ;;  %v225_v55 = vpop.f32.mrf.mxu0 }
  0xe3   :  { %v290_v21 = vpop.f32.mrf.mxu1  ;;  %v982_v22 = vpop.eup %981  ;;  %v354_v23 = vmul.f32 1.442695, %v324_v16  ;;  %v1468_v27 = vadd.f32 %v1340_v61, %v225_v55  ;;  %v520_v33 = vmul.f32 %v980_v20, %v1329_v57 }
  0xe4   :  { %v380_v26 = vmul.f32 1.442695, %v337_v17  ;;  %v1471_v28 = vadd.f32 %v1340_v61, %v290_v21  ;;  %v533_v29 = vmul.f32 %v982_v22, %v473_v18  ;;  %v907_v31 = vpop.f32.mrf.mxu0  ;;  %v479_v22 = vpop.permute.xlu1 %478 }
  0xe5   :  { %v946_v32 = vpop.f32.mrf.mxu1  ;;  %995 = vpow2.f32 %v354_v23  ;;  %v325_v34 = vmul.f32 0.5, %v1468_v27  ;;  %675 = vst.msk [vmem:[%s1773_s4 + $0x30] sm:$0xff] %vm53_vm0, %v1468_v27 }
  0xe6   :  { %v338_v38 = vmul.f32 0.5, %v1471_v28  ;;  %688 = vst.msk [vmem:[%s1773_s4 + $0x98] sm:$0xff] %vm53_vm0, %v1471_v28  ;;  %v984_v40 = vpop.eup %983  ;;  %997 = vpow2.f32 %v380_v26  ;;  %597 = vrot.lane.b32.xlu1 %v533_v29, %s1028_s15  ;;  %571 = vrot.lane.b32.xlu0 %v520_v33, %s1028_s15  ;;  %v230_v57 = vpop.f32.mrf.mxu0 }
  0xe7   :  { %v295_v41 = vpop.f32.mrf.mxu1  ;;  %v986_v42 = vpop.eup %985  ;;  %v356_v43 = vmul.f32 1.442695, %v325_v34  ;;  %v1489_v45 = vadd.f32 %v1340_v61, %v230_v57  ;;  %v521_v53 = vmul.f32 %v984_v40, %v1327_v56 }
  0xe8   :  { %v382_v44 = vmul.f32 1.442695, %v338_v38  ;;  %v1492_v49 = vadd.f32 %v1340_v61, %v295_v41  ;;  %v534_v50 = vmul.f32 %v986_v42, %v475_v39  ;;  %v910_v51 = vpop.f32.mrf.mxu0 }
  0xe9   :  { %v949_v52 = vpop.f32.mrf.mxu1  ;;  %999 = vpow2.f32 %v356_v43  ;;  %v326_v54 = vmul.f32 0.5, %v1489_v45  ;;  %676 = vst.msk [vmem:[%s1773_s4 + $0x38] sm:$0xff] %vm53_vm0, %v1489_v45  ;;  %v481_v43 = vpop.permute.xlu0 %480 }
  0xea   :  { %v339_v63 = vmul.f32 0.5, %v1492_v49  ;;  %689 = vst.msk [vmem:[%s1773_s4 + $0xa0] sm:$0xff] %vm53_vm0, %v1492_v49  ;;  %v988_v4 = vpop.eup %987  ;;  %1001 = vpow2.f32 %v382_v44  ;;  %599 = vrot.lane.b32.xlu0 %v534_v50, %s1028_s15  ;;  %573 = vrot.lane.b32.xlu1 %v521_v53, %s1028_s15  ;;  %v235_v56 = vpop.f32.mrf.mxu0 }
  0xeb   :  { %v300_v5 = vpop.f32.mrf.mxu1  ;;  %v990_v6 = vpop.eup %989  ;;  %v358_v9 = vmul.f32 1.442695, %v326_v54  ;;  %v1510_v11 = vadd.f32 %v1340_v61, %v235_v56  ;;  %v522_v20 = vmul.f32 %v988_v4, %v1331_v58 }
  0xec   :  { %v384_v10 = vmul.f32 1.442695, %v339_v63  ;;  %v1513_v15 = vadd.f32 %v1340_v61, %v300_v5  ;;  %v535_v16 = vmul.f32 %v990_v6, %v477_v0  ;;  %v913_v17 = vpop.f32.mrf.mxu0 }
  0xed   :  { %v952_v18 = vpop.f32.mrf.mxu1  ;;  %1003 = vpow2.f32 %v358_v9  ;;  %v327_v55 = vmul.f32 0.5, %v1510_v11  ;;  %677 = vst.msk [vmem:[%s1773_s4 + $0x40] sm:$0xff] %vm53_vm0, %v1510_v11  ;;  %v483_v9 = vpop.permute.xlu1 %482 }
  0xee   :  { %v340_v21 = vmul.f32 0.5, %v1513_v15  ;;  %690 = vst.msk [vmem:[%s1773_s4 + $0xa8] sm:$0xff] %vm53_vm0, %v1513_v15  ;;  %v992_v23 = vpop.eup %991  ;;  %1005 = vpow2.f32 %v384_v10  ;;  %601 = vrot.lane.b32.xlu1 %v535_v16, %s1028_s15  ;;  %575 = vrot.lane.b32.xlu0 %v522_v20, %s1028_s15  ;;  %v240_v58 = vpop.f32.mrf.mxu0 }
  0xef   :  { %v305_v26 = vpop.f32.mrf.mxu1  ;;  %v994_v29 = vpop.eup %993  ;;  %v360_v31 = vmul.f32 1.442695, %v327_v55  ;;  %v1531_v33 = vadd.f32 %v1340_v61, %v240_v58  ;;  %v523_v40 = vmul.f32 %v992_v23, %v1333_v59 }
  0xf0   :  { %v386_v32 = vmul.f32 1.442695, %v340_v21  ;;  %v1534_v34 = vadd.f32 %v1340_v61, %v305_v26  ;;  %v536_v38 = vmul.f32 %v994_v29, %v479_v22  ;;  %v916_v39 = vpop.f32.mrf.mxu0 }
  0xf1   :  { %v955_v57 = vpop.f32.mrf.mxu1  ;;  %1007 = vpow2.f32 %v360_v31  ;;  %v328_v41 = vmul.f32 0.5, %v1531_v33  ;;  %678 = vst.msk [vmem:[%s1773_s4 + $0x48] sm:$0xff] %vm53_vm0, %v1531_v33 }
  0xf2   :  { %v341_v42 = vmul.f32 0.5, %v1534_v34  ;;  %691 = vst.msk [vmem:[%s1773_s4 + $0xb0] sm:$0xff] %vm53_vm0, %v1534_v34  ;;  %v996_v59 = vpop.eup %995  ;;  %1009 = vpow2.f32 %v386_v32  ;;  %603 = vrot.lane.b32.xlu0 %v536_v38, %s1028_s15  ;;  %577 = vrot.lane.b32.xlu1 %v523_v40, %s1028_s15  ;;  %v245_v44 = vpop.f32.mrf.mxu0 }
  0xf3   :  { %v310_v50 = vpop.f32.mrf.mxu1  ;;  %v998_v51 = vpop.eup %997  ;;  %v362_v52 = vmul.f32 1.442695, %v328_v41  ;;  %v1552_v54 = vadd.f32 %v1340_v61, %v245_v44  ;;  %v524_v63 = vmul.f32 %v996_v59, %v1335_v60 }
  0xf4   :  { %v388_v53 = vmul.f32 1.442695, %v341_v42  ;;  %v537_v0 = vmul.f32 %v998_v51, %v481_v43  ;;  %v919_v4 = vpop.f32.mrf.mxu0  ;;  %v1556_v56 = vadd.f32 %v1340_v61, %v310_v50  ;;  %v485_v32 = vpop.permute.xlu0 %484 }
  0xf5   :  { %v958_v5 = vpop.f32.mrf.mxu1  ;;  %1011 = vpow2.f32 %v362_v52  ;;  %v329_v6 = vmul.f32 0.5, %v1552_v54  ;;  %679 = vst.msk [vmem:[%s1773_s4 + $0x50] sm:$0xff] %vm53_vm0, %v1552_v54  ;;  %v487_v51 = vpop.permute.xlu1 %486 }
  0xf6   :  { %v1000_v10 = vpop.eup %999  ;;  %1013 = vpow2.f32 %v388_v53  ;;  %605 = vrot.lane.b32.xlu1 %v537_v0, %s1028_s15  ;;  %579 = vrot.lane.b32.xlu0 %v524_v63, %s1028_s15  ;;  %v250_v60 = vpop.f32.mrf.mxu0  ;;  %v342_v16 = vmul.f32 0.5, %v1556_v56  ;;  %692 = vst.msk [vmem:[%s1773_s4 + $0xb8] sm:$0xff] %vm53_vm0, %v1556_v56 }
  0xf7   :  { %v315_v17 = vpop.f32.mrf.mxu1  ;;  %v1002_v18 = vpop.eup %1001  ;;  %v364_v20 = vmul.f32 1.442695, %v329_v6  ;;  %v1573_v55 = vadd.f32 %v1340_v61, %v250_v60  ;;  %v525_v21 = vmul.f32 %v1000_v10, %v1342_v62 }
  0xf8   :  { %v1577_v22 = vadd.f32 %v1340_v61, %v315_v17  ;;  %v538_v23 = vmul.f32 %v1002_v18, %v483_v9  ;;  %v922_v58 = vpop.f32.mrf.mxu0  ;;  %v390_v26 = vmul.f32 1.442695, %v342_v16  ;;  %v489_v0 = vpop.permute.xlu0 %488 }
  0xf9   :  { %v961_v29 = vpop.f32.mrf.mxu1  ;;  %1015 = vpow2.f32 %v364_v20  ;;  %v330_v31 = vmul.f32 0.5, %v1573_v55  ;;  %680 = vst.msk [vmem:[%s1773_s4 + $0x58] sm:$0xff] %vm53_vm0, %v1573_v55  ;;  %v491_v17 = vpop.permute.xlu1 %490 }
  0xfa   :  { %v343_v38 = vmul.f32 0.5, %v1577_v22  ;;  %693 = vst.msk [vmem:[%s1773_s4 + $0xc0] sm:$0xff] %vm53_vm0, %v1577_v22  ;;  %v1004_v62 = vpop.eup %1003  ;;  %607 = vrot.lane.b32.xlu0 %v538_v23, %s1028_s15  ;;  %581 = vrot.lane.b32.xlu1 %v525_v21, %s1028_s15  ;;  %v255_v39 = vpop.f32.mrf.mxu0  ;;  %1017 = vpow2.f32 %v390_v26 }
  0xfb   :  { %v1006_v40 = vpop.eup %1005  ;;  %v366_v57 = vmul.f32 1.442695, %v330_v31  ;;  %v1594_v41 = vadd.f32 %v1340_v61, %v255_v39  ;;  %v526_v42 = vmul.f32 %v1004_v62, %v1350_v3 }
  0xfc   :  { %v539_v43 = vmul.f32 %v1006_v40, %v485_v32  ;;  %v925_v59 = vpop.f32.mrf.mxu0  ;;  %v392_v44 = vmul.f32 1.442695, %v343_v38  ;;  %v493_v23 = vpop.permute.xlu0 %492 }
  0xfd   :  { %1019 = vpow2.f32 %v366_v57  ;;  %v331_v50 = vmul.f32 0.5, %v1594_v41  ;;  %681 = vst.msk [vmem:[%s1773_s4 + $0x60] sm:$0xff] %vm53_vm0, %v1594_v41 }
  0xfe   :  { %v1008_v52 = vpop.eup %1007  ;;  %609 = vrot.lane.b32.xlu1 %v539_v43, %s1028_s15  ;;  %583 = vrot.lane.b32.xlu0 %v526_v42, %s1028_s15  ;;  %1021 = vpow2.f32 %v392_v44 }
  0xff   :  { %v1010_v61 = vpop.eup %1009  ;;  %v368_v3 = vmul.f32 1.442695, %v331_v50  ;;  %v527_v53 = vmul.f32 %v1008_v52, %v1370_v14 }
 0x100   :  { %v540_v63 = vmul.f32 %v1010_v61, %v487_v51 }
 0x101   :  { %1023 = vpow2.f32 %v368_v3 }
 0x102   :  { %v1012_v4 = vpop.eup %1011  ;;  %611 = vrot.lane.b32.xlu0 %v540_v63, %s1028_s15  ;;  %585 = vrot.lane.b32.xlu1 %v527_v53, %s1028_s15 }
 0x103   :  { %v1014_v5 = vpop.eup %1013  ;;  %v528_v6 = vmul.f32 %v1012_v4, %v1384_v19 }
 0x104   :  { %v541_v9 = vmul.f32 %v1014_v5, %v489_v0 }
 0x106   :  { %v1016_v10 = vpop.eup %1015  ;;  %613 = vrot.lane.b32.xlu1 %v541_v9, %s1028_s15  ;;  %587 = vrot.lane.b32.xlu0 %v528_v6, %s1028_s15 }
 0x107   :  { %v529_v14 = vmul.f32 %v1016_v10, %v1404_v30  ;;  %v1018_v60 = vpop.eup %1017 }
 0x108   :  { %v542_v21 = vmul.f32 %v1018_v60, %v491_v17 }
 0x10a   :  { %v1020_v16 = vpop.eup %1019  ;;  %589 = vrot.lane.b32.xlu1 %v529_v14, %s1028_s15 }
 0x10b   :  { %v530_v18 = vmul.f32 %v1020_v16, %v1412_v37  ;;  %v1022_v20 = vpop.eup %1021 }
 0x10c   :  { %v543_v30 = vmul.f32 %v1022_v20, %v493_v23 }
 0x10d   :  { %591 = vrot.lane.b32.xlu0 %v530_v18, %s1028_s15 }
 0x10e   :  { %v1024_v19 = vpop.eup %1023 }
 0x10f   :  { %v531_v58 = vmul.f32 %v1024_v19, %v1432_v48 }
 0x111   :  { %615 = vrot.lane.b32.xlu0 %v542_v21, %s1028_s15  ;;  %593 = vrot.lane.b32.xlu1 %v531_v58, %s1028_s15 }
 0x115   :  { %617 = vrot.lane.b32.xlu1 %v543_v30, %s1028_s15 }
 0x153   :  { %v570_v29 = vpop.permute.xlu1 %569 }
 0x154   :  { %v596_v26 = vpop.permute.xlu0 %595  ;;  %v644_v37 = vadd.f32 %v570_v29, %v1345_v1 }
 0x155   :  { %v657_v31 = vadd.f32 %v596_v26, %v1348_v2 }
 0x156   :  { %719 = vrot.lane.b32.xlu0 %v644_v37, %s1029_s12 }
 0x157   :  { %745 = vrot.lane.b32.xlu1 %v657_v31, %s1029_s12 }
 0x158   :  { %v598_v32 = vpop.permute.xlu1 %597  ;;  %v572_v48 = vpop.permute.xlu0 %571 }
 0x159   :  { %v658_v38 = vadd.f32 %v598_v32, %v1368_v13  ;;  %v645_v62 = vadd.f32 %v572_v48, %v1365_v12 }
 0x15b   :  { %747 = vrot.lane.b32.xlu0 %v658_v38, %s1029_s12  ;;  %721 = vrot.lane.b32.xlu1 %v645_v62, %s1029_s12 }
 0x15c   :  { %v600_v39 = vpop.permute.xlu0 %599  ;;  %v574_v40 = vpop.permute.xlu1 %573 }
 0x15d   :  { %v659_v2 = vadd.f32 %v600_v39, %v1390_v25  ;;  %v646_v1 = vadd.f32 %v574_v40, %v1387_v24 }
 0x15f   :  { %723 = vrot.lane.b32.xlu0 %v646_v1, %s1029_s12  ;;  %749 = vrot.lane.b32.xlu1 %v659_v2, %s1029_s12 }
 0x160   :  { %v602_v57 = vpop.permute.xlu1 %601  ;;  %v576_v42 = vpop.permute.xlu0 %575 }
 0x161   :  { %v660_v13 = vadd.f32 %v602_v57, %v1410_v36  ;;  %v647_v12 = vadd.f32 %v576_v42, %v1407_v35 }
 0x163   :  { %751 = vrot.lane.b32.xlu0 %v660_v13, %s1029_s12  ;;  %725 = vrot.lane.b32.xlu1 %v647_v12, %s1029_s12 }
 0x164   :  { %v604_v43 = vpop.permute.xlu0 %603  ;;  %v578_v59 = vpop.permute.xlu1 %577 }
 0x165   :  { %v661_v25 = vadd.f32 %v604_v43, %v1430_v47  ;;  %v648_v24 = vadd.f32 %v578_v59, %v1427_v46 }
 0x167   :  { %727 = vrot.lane.b32.xlu0 %v648_v24, %s1029_s12  ;;  %753 = vrot.lane.b32.xlu1 %v661_v25, %s1029_s12 }
 0x168   :  { %v606_v44 = vpop.permute.xlu1 %605  ;;  %v580_v50 = vpop.permute.xlu0 %579 }
 0x169   :  { %v662_v36 = vadd.f32 %v606_v44, %v1450_v8  ;;  %v649_v35 = vadd.f32 %v580_v50, %v1447_v7 }
 0x16b   :  { %755 = vrot.lane.b32.xlu0 %v662_v36, %s1029_s12  ;;  %729 = vrot.lane.b32.xlu1 %v649_v35, %s1029_s12 }
 0x16c   :  { %v608_v51 = vpop.permute.xlu0 %607  ;;  %v582_v52 = vpop.permute.xlu1 %581 }
 0x16d   :  { %v663_v47 = vadd.f32 %v608_v51, %v1471_v28  ;;  %v650_v46 = vadd.f32 %v582_v52, %v1468_v27 }
 0x16f   :  { %731 = vrot.lane.b32.xlu0 %v650_v46, %s1029_s12  ;;  %757 = vrot.lane.b32.xlu1 %v663_v47, %s1029_s12 }
 0x170   :  { %v610_v61 = vpop.permute.xlu1 %609  ;;  %v584_v3 = vpop.permute.xlu0 %583 }
 0x171   :  { %v664_v8 = vadd.f32 %v610_v61, %v1492_v49  ;;  %v651_v7 = vadd.f32 %v584_v3, %v1489_v45 }
 0x173   :  { %759 = vrot.lane.b32.xlu0 %v664_v8, %s1029_s12  ;;  %733 = vrot.lane.b32.xlu1 %v651_v7, %s1029_s12 }
 0x174   :  { %v612_v53 = vpop.permute.xlu0 %611  ;;  %v586_v63 = vpop.permute.xlu1 %585 }
 0x175   :  { %v665_v28 = vadd.f32 %v612_v53, %v1513_v15  ;;  %v652_v27 = vadd.f32 %v586_v63, %v1510_v11 }
 0x177   :  { %735 = vrot.lane.b32.xlu0 %v652_v27, %s1029_s12  ;;  %761 = vrot.lane.b32.xlu1 %v665_v28, %s1029_s12 }
 0x178   :  { %v614_v0 = vpop.permute.xlu1 %613  ;;  %v588_v4 = vpop.permute.xlu0 %587 }
 0x179   :  { %v666_v49 = vadd.f32 %v614_v0, %v1534_v34  ;;  %v653_v45 = vadd.f32 %v588_v4, %v1531_v33 }
 0x17b   :  { %763 = vrot.lane.b32.xlu0 %v666_v49, %s1029_s12  ;;  %737 = vrot.lane.b32.xlu1 %v653_v45, %s1029_s12 }
 0x17c   :  { %v590_v5 = vpop.permute.xlu1 %589 }
 0x17d   :  { %v654_v6 = vadd.f32 %v590_v5, %v1552_v54 }
 0x17f   :  { %739 = vrot.lane.b32.xlu0 %v654_v6, %s1029_s12  ;;  %v592_v11 = vpop.permute.xlu0 %591 }
 0x180   :  { %v655_v15 = vadd.f32 %v592_v11, %v1573_v55 }
 0x182   :  { %741 = vrot.lane.b32.xlu1 %v655_v15, %s1029_s12 }
 0x183   :  { %v616_v9 = vpop.permute.xlu0 %615  ;;  %v594_v10 = vpop.permute.xlu1 %593 }
 0x184   :  { %v667_v34 = vadd.f32 %v616_v9, %v1556_v56  ;;  %v656_v33 = vadd.f32 %v594_v10, %v1594_v41 }
 0x186   :  { %765 = vrot.lane.b32.xlu1 %v667_v34, %s1029_s12  ;;  %743 = vrot.lane.b32.xlu0 %v656_v33, %s1029_s12 }
 0x187   :  { %v618_v14 = vpop.permute.xlu1 %617 }
 0x188   :  { %v668_v54 = vadd.f32 %v618_v14, %v1577_v22 }
 0x18a   :  { %767 = vrot.lane.b32.xlu0 %v668_v54, %s1029_s12 }
 0x1c8   :  { %v720_v60 = vpop.permute.xlu0 %719 }
 0x1c9   :  { %v746_v55 = vpop.permute.xlu1 %745  ;;  %795 = vst.msk [vmem:[%s1773_s4] sm:$0xff] %vm794_vm2, %v720_v60 }
 0x1ca   :  { %808 = vst.msk [vmem:[%s1773_s4 + $0x68] sm:$0xff] %vm794_vm2, %v746_v55 }
 0x1cd   :  { %v748_v56 = vpop.permute.xlu0 %747  ;;  %v722_v41 = vpop.permute.xlu1 %721 }
 0x1ce   :  { %809 = vst.msk [vmem:[%s1773_s4 + $0x70] sm:$0xff] %vm794_vm2, %v748_v56  ;;  %796 = vst.msk [vmem:[%s1773_s4 + $0x8] sm:$0xff] %vm794_vm2, %v722_v41 }
 0x1d1   :  { %v724_v22 = vpop.permute.xlu0 %723  ;;  %v750_v16 = vpop.permute.xlu1 %749 }
 0x1d2   :  { %797 = vst.msk [vmem:[%s1773_s4 + $0x10] sm:$0xff] %vm794_vm2, %v724_v22  ;;  %810 = vst.msk [vmem:[%s1773_s4 + $0x78] sm:$0xff] %vm794_vm2, %v750_v16 }
 0x1d5   :  { %v752_v17 = vpop.permute.xlu0 %751  ;;  %v726_v18 = vpop.permute.xlu1 %725 }
 0x1d6   :  { %811 = vst.msk [vmem:[%s1773_s4 + $0x80] sm:$0xff] %vm794_vm2, %v752_v17  ;;  %798 = vst.msk [vmem:[%s1773_s4 + $0x18] sm:$0xff] %vm794_vm2, %v726_v18 }
 0x1d9   :  { %v728_v20 = vpop.permute.xlu0 %727  ;;  %v754_v21 = vpop.permute.xlu1 %753 }
 0x1da   :  { %799 = vst.msk [vmem:[%s1773_s4 + $0x20] sm:$0xff] %vm794_vm2, %v728_v20  ;;  %812 = vst.msk [vmem:[%s1773_s4 + $0x88] sm:$0xff] %vm794_vm2, %v754_v21 }
 0x1dd   :  { %v756_v19 = vpop.permute.xlu0 %755  ;;  %v730_v23 = vpop.permute.xlu1 %729 }
 0x1de   :  { %813 = vst.msk [vmem:[%s1773_s4 + $0x90] sm:$0xff] %vm794_vm2, %v756_v19  ;;  %800 = vst.msk [vmem:[%s1773_s4 + $0x28] sm:$0xff] %vm794_vm2, %v730_v23 }
 0x1e1   :  { %v732_v58 = vpop.permute.xlu0 %731  ;;  %v758_v30 = vpop.permute.xlu1 %757 }
 0x1e2   :  { %801 = vst.msk [vmem:[%s1773_s4 + $0x30] sm:$0xff] %vm794_vm2, %v732_v58  ;;  %814 = vst.msk [vmem:[%s1773_s4 + $0x98] sm:$0xff] %vm794_vm2, %v758_v30 }
 0x1e5   :  { %v760_v26 = vpop.permute.xlu0 %759  ;;  %v734_v29 = vpop.permute.xlu1 %733 }
 0x1e6   :  { %815 = vst.msk [vmem:[%s1773_s4 + $0xa0] sm:$0xff] %vm794_vm2, %v760_v26  ;;  %802 = vst.msk [vmem:[%s1773_s4 + $0x38] sm:$0xff] %vm794_vm2, %v734_v29 }
 0x1e9   :  { %v736_v31 = vpop.permute.xlu0 %735  ;;  %v762_v37 = vpop.permute.xlu1 %761 }
 0x1ea   :  { %803 = vst.msk [vmem:[%s1773_s4 + $0x40] sm:$0xff] %vm794_vm2, %v736_v31  ;;  %816 = vst.msk [vmem:[%s1773_s4 + $0xa8] sm:$0xff] %vm794_vm2, %v762_v37 }
 0x1ed   :  { %v764_v32 = vpop.permute.xlu0 %763  ;;  %v738_v48 = vpop.permute.xlu1 %737 }
 0x1ee   :  { %817 = vst.msk [vmem:[%s1773_s4 + $0xb0] sm:$0xff] %vm794_vm2, %v764_v32  ;;  %804 = vst.msk [vmem:[%s1773_s4 + $0x48] sm:$0xff] %vm794_vm2, %v738_v48 }
 0x1f1   :  { %v740_v38 = vpop.permute.xlu0 %739 }
 0x1f2   :  { %805 = vst.msk [vmem:[%s1773_s4 + $0x50] sm:$0xff] %vm794_vm2, %v740_v38 }
 0x1f4   :  { %v742_v62 = vpop.permute.xlu1 %741 }
 0x1f5   :  { %806 = vst.msk [vmem:[%s1773_s4 + $0x58] sm:$0xff] %vm794_vm2, %v742_v62 }
 0x1f8   :  { %v744_v39 = vpop.permute.xlu0 %743  ;;  %v766_v40 = vpop.permute.xlu1 %765 }
 0x1f9   :  { %807 = vst.msk [vmem:[%s1773_s4 + $0x60] sm:$0xff] %vm794_vm2, %v744_v39  ;;  %818 = vst.msk [vmem:[%s1773_s4 + $0xb8] sm:$0xff] %vm794_vm2, %v766_v40 }
 0x1fc   :  { %v768_v2 = vpop.permute.xlu0 %767 }
 0x1fd   :  { %819 = vst.msk [vmem:[%s1773_s4 + $0xc0] sm:$0xff] %vm794_vm2, %v768_v2 }

</bundles_post_ra>
